<compile_context>
chip_gen: v7x
topology: tpu7x:2x2x1
jax: 0.10.0
libtpu: 0.0.40
codegen_flags: <defaults>
</compile_context>

<pallas_src>
import math

import jax
import jax.numpy as jnp
from jax import lax
from jax.experimental import pallas as pl
from jax.experimental.pallas import tpu as pltpu


_INV_SQRT2 = 0.7071067811865476


def _gelu_exact_f32(x):
    # PyTorch nn.GELU() default: exact erf-based GELU, computed in float32.
    x = x.astype(jnp.float32)
    return 0.5 * x * (1.0 + lax.erf(x * jnp.float32(_INV_SQRT2)))


def _mlp_kernel(x_ref, w1_ref, b1_ref, w2_ref, b2_ref, o_ref, acc_ref):
    # x_ref:  (tm, D_in)    row tile of flattened tokens
    # w1_ref: (D_in, tk)    fc1 weight chunk (pre-transposed)
    # b1_ref: (1, tk)       fc1 bias chunk
    # w2_ref: (tk, D_out)   fc2 weight chunk (pre-transposed)
    # b2_ref: (1, D_out)    fc2 bias
    # o_ref:  (tm, D_out)   output tile (resident across the hidden-chunk axis)
    # acc_ref:(tm, D_out)   f32 accumulator in VMEM scratch
    k = pl.program_id(1)

    @pl.when(k == 0)
    def _():
        acc_ref[...] = jnp.zeros_like(acc_ref)

    x = x_ref[...].astype(w1_ref.dtype)
    h = jnp.dot(x, w1_ref[...], preferred_element_type=jnp.float32)
    h = h + b1_ref[...].astype(jnp.float32)
    h = _gelu_exact_f32(h)
    # Dropout(p=0.0) is the identity -> nothing to do.
    acc_ref[...] += jnp.dot(h.astype(w2_ref.dtype), w2_ref[...],
                            preferred_element_type=jnp.float32)

    @pl.when(k == pl.num_programs(1) - 1)
    def _():
        o_ref[...] = (acc_ref[...] + b2_ref[...].astype(jnp.float32)
                      ).astype(o_ref.dtype)


def _cdiv(a, b):
    return (a + b - 1) // b


def _round_up(x, m):
    return _cdiv(x, m) * m


def _pick_tk(d_hid, tk_max):
    """Largest multiple of 128 that divides d_hid and is <= tk_max.

    The hidden dim is a reduction dim, so a ragged last chunk would contaminate
    the accumulator; we therefore require an exact divisor (or fall back to the
    full, untiled hidden dim)."""
    if d_hid <= tk_max:
        return d_hid
    t = (tk_max // 128) * 128
    while t >= 128:
        if d_hid % t == 0:
            return t
        t -= 128
    return d_hid  # fallback: hidden dim fully resident


def _pick_tm(M, tm_max):
    Ma = _round_up(max(M, 1), 8)
    if Ma <= tm_max:
        # Make at least 2 row tiles when possible so both v7x TensorCores
        # get work under the "parallel" row axis.
        return max(8, _round_up(_cdiv(Ma, 2), 8))
    return tm_max


def mlp_forward(x, w1, b1, w2, b2, *, tm_max=256, tk_max=512,
                use_bf16_matmul=False):
    """Fused MLP forward: y = fc2(gelu(fc1(x))) with dropout p=0.0.

    x:  (..., in_features)
    w1: (hidden_features, in_features)   -- PyTorch nn.Linear layout
    b1: (hidden_features,)
    w2: (out_features, hidden_features)  -- PyTorch nn.Linear layout
    b2: (out_features,)
    Returns (..., out_features).
    """
    orig_shape = x.shape
    d_in = orig_shape[-1]
    d_hid, d_in_w = w1.shape
    d_out, d_hid_w = w2.shape
    assert d_in_w == d_in and d_hid_w == d_hid

    x2d = x.reshape(-1, d_in)
    M = x2d.shape[0]

    tm = _pick_tm(M, tm_max)
    tk = _pick_tk(d_hid, tk_max)
    grid = (_cdiv(M, tm), d_hid // tk)

    # Pre-transpose weights once (x @ W^T + b  ->  x @ Wt + b).
    w_dtype = jnp.bfloat16 if use_bf16_matmul else w1.dtype
    w1t = w1.T.astype(w_dtype)           # (D_in, D_hid)
    w2t = w2.T.astype(w_dtype)           # (D_hid, D_out)
    b1_2d = b1.reshape(1, d_hid).astype(jnp.float32)
    b2_2d = b2.reshape(1, d_out).astype(jnp.float32)

    # Scoped-VMEM budget from the actual tile sizes (double-buffered inputs
    # and output, single accumulator) + headroom; clamped to a range that is
    # safe on v5e/v6e/v7x.
    x_item = x2d.dtype.itemsize
    w_item = jnp.dtype(w_dtype).itemsize
    vmem_need = (
        2 * tm * d_in * x_item                     # x row tile (dbuf)
        + 2 * tm * d_out * x_item                  # output tile (dbuf)
        + 2 * (d_in * tk + tk * d_out) * w_item    # W1/W2 chunks (dbuf)
        + 2 * (tk + d_out) * 4                     # bias chunks (dbuf)
        + tm * d_out * 4                           # f32 accumulator
    )
    vmem_limit = int(min(100 << 20, max(32 << 20, vmem_need + (8 << 20))))

    out = pl.pallas_call(
        _mlp_kernel,
        out_shape=jax.ShapeDtypeStruct((M, d_out), x.dtype),
        grid_spec=pltpu.PrefetchScalarGridSpec(
            num_scalar_prefetch=0,
            grid=grid,
            in_specs=[
                pl.BlockSpec((tm, d_in), lambda i, k: (i, 0)),    # x row tile
                pl.BlockSpec((d_in, tk), lambda i, k: (0, k)),    # W1^T chunk
                pl.BlockSpec((1, tk), lambda i, k: (0, k)),       # b1 chunk
                pl.BlockSpec((tk, d_out), lambda i, k: (k, 0)),   # W2^T chunk
                pl.BlockSpec((1, d_out), lambda i, k: (0, 0)),    # b2
            ],
            out_specs=pl.BlockSpec((tm, d_out), lambda i, k: (i, 0)),
            scratch_shapes=[pltpu.VMEM((tm, d_out), jnp.float32)],
        ),
        compiler_params=pltpu.CompilerParams(
            dimension_semantics=("parallel", "arbitrary"),
            vmem_limit_bytes=vmem_limit),
    )(x2d, w1t, b1_2d, w2t, b2_2d)

    return out.reshape(orig_shape[:-1] + (d_out,))


def _mlp_reference(x, w1, b1, w2, b2):
    h = x @ w1.T + b1
    h = 0.5 * h * (1.0 + lax.erf(h / jnp.sqrt(2.0)))
    return h @ w2.T + b2


def _make_params(key, d_in, d_hid, d_out):
    kw1, kb1, kw2, kb2 = jax.random.split(key, 4)
    # PyTorch nn.Linear default init: U(-1/sqrt(fan_in), 1/sqrt(fan_in)).
    bound1 = 1.0 / math.sqrt(d_in)
    w1 = jax.random.uniform(kw1, (d_hid, d_in), jnp.float32, -bound1, bound1)
    b1 = jax.random.uniform(kb1, (d_hid,), jnp.float32, -bound1, bound1)
    bound2 = 1.0 / math.sqrt(d_hid)
    w2 = jax.random.uniform(kw2, (d_out, d_hid), jnp.float32, -bound2, bound2)
    b2 = jax.random.uniform(kb2, (d_out,), jnp.float32, -bound2, bound2)
    return w1, b1, w2, b2


if __name__ == "__main__":
    key = jax.random.PRNGKey(0)
    k1, k2, kx1, kx2 = jax.random.split(key, 4)

    # Test 1: small shapes consistent with the module
    # (batch=2, seq=8, in_features=32, hidden_features=64, out_features=32),
    # exact f32 path -> must bit-track the erf-GELU reference closely.
    B, S, D_in, D_hid, D_out = 2, 8, 32, 64, 32
    x = jax.random.normal(kx1, (B, S, D_in), dtype=jnp.float32)
    w1, b1, w2, b2 = _make_params(k1, D_in, D_hid, D_out)

    out = mlp_forward(x, w1, b1, w2, b2, use_bf16_matmul=False)
    jax.block_until_ready(out)
    assert out.shape == (B, S, D_out)
    ref = _mlp_reference(x, w1, b1, w2, b2)
    assert jnp.allclose(out, ref, atol=1e-5, rtol=1e-5), "f32 path mismatch"

    # Test 2: ragged row count (M not a multiple of tm), multiple hidden
    # chunks (d_hid split into 2 chunks via tk_max), bf16 MXU operands with
    # f32 accumulation -> looser tolerance.
    B2, S2, D_in2, D_hid2, D_out2 = 2, 13, 32, 256, 32
    x2 = jax.random.normal(kx2, (B2, S2, D_in2), dtype=jnp.float32)
    w1b, b1b, w2b, b2b = _make_params(k2, D_in2, D_hid2, D_out2)

    out2 = mlp_forward(x2, w1b, b1b, w2b, b2b, tk_max=128,
                       use_bf16_matmul=True)
    jax.block_until_ready(out2)
    assert out2.shape == (B2, S2, D_out2)
    ref2 = _mlp_reference(x2, w1b, b1b, w2b, b2b)
    assert jnp.allclose(out2, ref2, atol=5e-2, rtol=5e-2), "bf16 path mismatch"

    print("KERNEL_OK")
</pallas_src>

<mosaic_0001>
module attributes {stable_mosaic.version = 11 : i64} {
  func.func @_mlp_kernel(%arg0: i32, %arg1: i32, %arg2: memref<8x32xf32, #tpu.memory_space<vmem>>, %arg3: memref<32x64xf32, #tpu.memory_space<vmem>>, %arg4: memref<1x64xf32, #tpu.memory_space<vmem>>, %arg5: memref<64x32xf32, #tpu.memory_space<vmem>>, %arg6: memref<1x32xf32, #tpu.memory_space<vmem>>, %arg7: memref<8x32xf32, #tpu.memory_space<vmem>>, %arg8: memref<8x32xf32, #tpu.memory_space<vmem>>) attributes {dimension_semantics = [#tpu.dimension_semantics<parallel>, #tpu.dimension_semantics<arbitrary>], iteration_bounds = array<i64: 2, 1>, scalar_prefetch = 0 : i64, scratch_operands = 1 : i64, tpu.core_type = #tpu.core_type<tc>, window_params = [{transform_indices = @transform_0, window_bounds = array<i64: 8, 32>}, {transform_indices = @transform_1, window_bounds = array<i64: 32, 64>}, {transform_indices = @transform_2, window_bounds = array<i64: 1, 64>}, {transform_indices = @transform_3, window_bounds = array<i64: 64, 32>}, {pipeline_mode = #tpu.pipeline_mode<synchronous>, transform_indices = @transform_4, window_bounds = array<i64: 1, 32>}, {transform_indices = @transform_5, window_bounds = array<i64: 8, 32>}]} {
    %c0_i32 = arith.constant 0 : i32
    %0 = arith.cmpi eq, %arg1, %c0_i32 : i32
    %1 = arith.extui %0 : i1 to i32
    %c0_i32_0 = arith.constant 0 : i32
    %2 = arith.cmpi ne, %1, %c0_i32_0 : i32
    scf.if %2 {
      %cst_18 = arith.constant 0.000000e+00 : f32
      %25 = vector.broadcast %cst_18 : f32 to vector<8x32xf32>
      %c0_19 = arith.constant 0 : index
      %c0_20 = arith.constant 0 : index
      %26 = vector.load %arg8[%c0_19, %c0_20] : memref<8x32xf32, #tpu.memory_space<vmem>>, vector<8x32xf32>
      tpu.vector_store %arg8[%c0_19, %c0_20], %25 {strides = array<i32>} : memref<8x32xf32, #tpu.memory_space<vmem>>, vector<8x32xf32>,
    } else {
    }
    %c0 = arith.constant 0 : index
    %c0_1 = arith.constant 0 : index
    %3 = vector.load %arg2[%c0, %c0_1] : memref<8x32xf32, #tpu.memory_space<vmem>>, vector<8x32xf32>
    %c0_2 = arith.constant 0 : index
    %c0_3 = arith.constant 0 : index
    %4 = vector.load %arg3[%c0_2, %c0_3] : memref<32x64xf32, #tpu.memory_space<vmem>>, vector<32x64xf32>
    %cst = arith.constant dense<0.000000e+00> : vector<8x64xf32>
    %5 = tpu.matmul %3, %4, %cst {dimension_numbers = #tpu.dot_dimension_numbers<[1], [0], [0], [1], [0, 0, 1, 1], [], []>} : vector<8x32xf32>, vector<32x64xf32>, vector<8x64xf32> -> vector<8x64xf32>
    %c0_4 = arith.constant 0 : index
    %c0_5 = arith.constant 0 : index
    %6 = vector.load %arg4[%c0_4, %c0_5] : memref<1x64xf32, #tpu.memory_space<vmem>>, vector<1x64xf32>
    %7 = vector.broadcast %6 : vector<1x64xf32> to vector<8x64xf32>
    %8 = arith.addf %5, %7 : vector<8x64xf32>
    %cst_6 = arith.constant 5.000000e-01 : f32
    %9 = vector.broadcast %cst_6 : f32 to vector<8x64xf32>
    %10 = arith.mulf %9, %8 : vector<8x64xf32>
    %cst_7 = arith.constant 0.707106769 : f32
    %11 = vector.broadcast %cst_7 : f32 to vector<8x64xf32>
    %12 = arith.mulf %8, %11 : vector<8x64xf32>
    %13 = math.erf %12 : vector<8x64xf32>
    %cst_8 = arith.constant 1.000000e+00 : f32
    %14 = vector.broadcast %cst_8 : f32 to vector<8x64xf32>
    %15 = arith.addf %14, %13 : vector<8x64xf32>
    %16 = arith.mulf %10, %15 : vector<8x64xf32>
    %c0_9 = arith.constant 0 : index
    %c0_10 = arith.constant 0 : index
    %17 = vector.load %arg8[%c0_9, %c0_10] : memref<8x32xf32, #tpu.memory_space<vmem>>, vector<8x32xf32>
    %c0_11 = arith.constant 0 : index
    %c0_12 = arith.constant 0 : index
    %18 = vector.load %arg5[%c0_11, %c0_12] : memref<64x32xf32, #tpu.memory_space<vmem>>, vector<64x32xf32>
    %cst_13 = arith.constant dense<0.000000e+00> : vector<8x32xf32>
    %19 = tpu.matmul %16, %18, %cst_13 {dimension_numbers = #tpu.dot_dimension_numbers<[1], [0], [0], [1], [0, 0, 1, 1], [], []>} : vector<8x64xf32>, vector<64x32xf32>, vector<8x32xf32> -> vector<8x32xf32>
    %20 = arith.addf %17, %19 : vector<8x32xf32>
    %c0_14 = arith.constant 0 : index
    %c0_15 = arith.constant 0 : index
    %21 = vector.load %arg8[%c0_14, %c0_15] : memref<8x32xf32, #tpu.memory_space<vmem>>, vector<8x32xf32>
    tpu.vector_store %arg8[%c0_14, %c0_15], %20 {strides = array<i32>} : memref<8x32xf32, #tpu.memory_space<vmem>>, vector<8x32xf32>,
    %c0_i32_16 = arith.constant 0 : i32
    %22 = arith.cmpi eq, %arg1, %c0_i32_16 : i32
    %23 = arith.extui %22 : i1 to i32
    %c0_i32_17 = arith.constant 0 : i32
    %24 = arith.cmpi ne, %23, %c0_i32_17 : i32
    scf.if %24 {
      %c0_18 = arith.constant 0 : index
      %c0_19 = arith.constant 0 : index
      %25 = vector.load %arg8[%c0_18, %c0_19] : memref<8x32xf32, #tpu.memory_space<vmem>>, vector<8x32xf32>
      %c0_20 = arith.constant 0 : index
      %c0_21 = arith.constant 0 : index
      %26 = vector.load %arg6[%c0_20, %c0_21] : memref<1x32xf32, #tpu.memory_space<vmem>>, vector<1x32xf32>
      %27 = vector.broadcast %26 : vector<1x32xf32> to vector<8x32xf32>
      %28 = arith.addf %25, %27 : vector<8x32xf32>
      %c0_22 = arith.constant 0 : index
      %c0_23 = arith.constant 0 : index
      %29 = vector.load %arg7[%c0_22, %c0_23] : memref<8x32xf32, #tpu.memory_space<vmem>>, vector<8x32xf32>
      tpu.vector_store %arg7[%c0_22, %c0_23], %28 {strides = array<i32>} : memref<8x32xf32, #tpu.memory_space<vmem>>, vector<8x32xf32>,
    } else {
    }
    return
  }
  func.func @transform_0(%arg0: i32, %arg1: i32) -> (i32, i32) {
    %c0_i32 = arith.constant 0 : i32
    %c0_i32_0 = arith.constant 0 : i32
    return %arg0, %c0_i32 : i32, i32
  }
  func.func @transform_1(%arg0: i32, %arg1: i32) -> (i32, i32) {
    %c0_i32 = arith.constant 0 : i32
    %c0_i32_0 = arith.constant 0 : i32
    return %c0_i32, %arg1 : i32, i32
  }
  func.func @transform_2(%arg0: i32, %arg1: i32) -> (i32, i32) {
    %c0_i32 = arith.constant 0 : i32
    %c0_i32_0 = arith.constant 0 : i32
    return %c0_i32, %arg1 : i32, i32
  }
  func.func @transform_3(%arg0: i32, %arg1: i32) -> (i32, i32) {
    %c0_i32 = arith.constant 0 : i32
    %c0_i32_0 = arith.constant 0 : i32
    return %arg1, %c0_i32 : i32, i32
  }
  func.func @transform_4(%arg0: i32, %arg1: i32) -> (i32, i32) {
    %c0_i32 = arith.constant 0 : i32
    %c0_i32_0 = arith.constant 0 : i32
    %c0_i32_1 = arith.constant 0 : i32
    return %c0_i32, %c0_i32_0 : i32, i32
  }
  func.func @transform_5(%arg0: i32, %arg1: i32) -> (i32, i32) {
    %c0_i32 = arith.constant 0 : i32
    %c0_i32_0 = arith.constant 0 : i32
    return %arg0, %c0_i32 : i32, i32
  }
}

</mosaic_0001>

<bundles_post_ra>
// kernel: tpu_custom_call.1
= control target key start
LH: loop header
LB: loop body
LE: loop exit
PB: predicated region body
PF: predicated region fallthrough
CT: control target
= control target key end

     0   :  { %10 = vsyncpa [#allocation4], 0  ;;  %s1015_s0 = inlined_call_operand.vmem [shape: f32[16,32], index: 0, kind: input, shape index: {}]   ;;  %s1016_s1 = inlined_call_operand.vmem [shape: f32[32,64], index: 1, kind: input, shape index: {}]   ;;  %s1017_s2 = inlined_call_operand.vmem [shape: f32[1,64], index: 2, kind: input, shape index: {}]   ;;  %s1018_s3 = inlined_call_operand.vmem [shape: f32[64,32], index: 3, kind: input, shape index: {}]   ;;  %s1019_s4 = inlined_call_operand.vmem [shape: f32[1,32], index: 4, kind: input, shape index: {}]   ;;  %s1020_s5 = inlined_call_operand.hbm [shape: f32[16,32], index: 5, kind: output, shape index: {}]  }
   0x1   :  { %12 = vsyncpa [#allocation4 + $0x1], 0  ;;  %s857_s18 = smov 0   ;;  %s859_s19 = smov 0  }
   0x2   :  { %s861_s20 = smov 0   ;;  %s863_s21 = smov 0  }
   0x3   :  { %s865_s22 = smov 0   ;;  %s867_s23 = smov 0  }
   0x4 LB: > { %s603_s24 = sadd.s32 4294967295, %s821_s23   ;;  %s604_s25 = sadd.s32 4294967294, %s821_s23   ;;  %s821_s23 = sphi %s867_s23, %s18_s23   ;;  %s817_s22 = sphi %s865_s22, %s1027_s22   ;;  %s813_s21 = sphi %s863_s21, %s1026_s21   ;;  %s809_s20 = sphi %s861_s20, %s1025_s20   ;;  %s805_s19 = sphi %s859_s19, %s1024_s19   ;;  %s801_s18 = sphi %s857_s18, %s1023_s18  }
   0x5   : > { %s30_s26 = sadd.s32 1, %s817_s22  ;;  %s162_s27 = sadd.s32 1, %s809_s20 }
   0x6   : > { %p32_p0 = scmp.ge.s32.totalorder %s30_s26, 2  ;;  %p172_p1 = scmp.ne.s32.totalorder %s809_s20, %s805_s19 }
   0x7   : > { %p173_p2 = scmp.eq.s32.totalorder %s603_s24, 1  ;;  %p178_p3 = scmp.ne.s32.totalorder %s805_s19, %s801_s18 }
   0x8   : > { %s1029_s26 = smov (%p32_p0, %s30_s26), 0  ;;  %p179_p5 = scmp.eq.s32.totalorder %s604_s25, 1 }
   0x9   : > { %p897_p4 = por %p173_p2, %p172_p1  ;;  %s159_s29 = ssub.s32 %s817_s22, %s1029_s26 }
   0xa   : > { %p610_p6 = scmp.ge.s32.totalorder %s821_s23, 1  ;;  %p160_p7 = scmp.eq.s32.totalorder %s159_s29, 0 }
   0xb   : > { %p904_p8 = por %p179_p5, %p178_p3  ;;  %p229_p9 = scmp.lt.s32.totalorder %s821_s23, 3 }
   0xc   : > { %s910_s6 = scalar_select %p160_p7, %s809_s20, %s162_s27  }
   0xd   : > { %p230_p10 = pnand %p610_p6, %p229_p9 }
   0xe   : > { %v292_v0 = vld [vmem:[%s1016_s1] sm:$0xff] (!%p230_p10)  ;;  %v293_v1 = vld [vmem:[%s1016_s1 + $0x8] sm:$0xff] (!%p230_p10)  ;;  %v294_v2 = vld [vmem:[%s1016_s1 + $0x10] sm:$0xff] (!%p230_p10)  ;;  %v823_v3 = vmov (!%p230_p10), 0.0|0.0   ;;  %vm824_vm0 = vmmov (!%p230_p10), 0   ;;  %v825_v6 = vmov (!%p230_p10), 0.0  }
   0xf   : > { %233 = sbr.rel (%p230_p10) target bundleno = 496 (0x1f0), region = 40  ;;  %665 = vmatprep.subr.bf16.mxu0 (!%p230_p10), %v823_v3  ;;  %v666_v4 = vpack.c.bf16 (!%p230_p10), %v293_v1, %v292_v0  ;;  %v295_v5 = vld [vmem:[%s1016_s1 + $0x18] sm:$0xff] (!%p230_p10)  ;;  %643 = vmatprep.mubr.msk.f32.mxu0 (!%p230_p10), %vm824_vm0, %v825_v6  ;;  %p268_p11 = scmp.lt.s32.totalorder (!%p230_p10), %s813_s21, 1  ;;  %vm289_vm1 = vcmask (!%p230_p10), 261120   ;;  %v383_v9 = vld [vmem:[%s1018_s3] sm:$0xff] (!%p230_p10)  ;;  %v384_v10 = vld [vmem:[%s1018_s3 + $0x8] sm:$0xff] (!%p230_p10) }
  0x10   : > { %290 = vst.msk [vmem:[#allocation2] sm:$0xff] (!%p230_p10), %vm289_vm1, %v825_v6  ;;  %671 = vmatprep.subr.bf16.mxu1 (!%p230_p10), %v823_v3  ;;  %662 = vmatprep.mubr.msk.f32.mxu1 (!%p230_p10), %vm824_vm0, %v825_v6  ;;  %v669_v7 = vpack.c.bf16 (!%p230_p10), %v295_v5, %v294_v2  ;;  %v672_v11 = vpack.c.bf16 (!%p230_p10), %v384_v10, %v383_v9  ;;  %v385_v12 = vld [vmem:[%s1018_s3 + $0x10] sm:$0xff] (!%p230_p10)  ;;  %v386_v13 = vld [vmem:[%s1018_s3 + $0x18] sm:$0xff] (!%p230_p10)  ;;  %v387_v15 = vld [vmem:[%s1018_s3 + $0x20] sm:$0xff] (!%p230_p10)  ;;  %vm391_vm2 = vcmask (!%p230_p10), 523264   ;;  %s265_s8 = sand.u32 (!%p230_p10), 1, %s805_s19  }
  0x11   : > { %667 = vmatpush3.bf16.msra.mxu0 (!%p230_p10), %v666_v4  ;;  %v675_v14 = vpack.c.bf16 (!%p230_p10), %v386_v13, %v385_v12  ;;  %v388_v16 = vld [vmem:[%s1018_s3 + $0x28] sm:$0xff] (!%p230_p10)  ;;  %v389_v18 = vld [vmem:[%s1018_s3 + $0x30] sm:$0xff] (!%p230_p10)  ;;  %v390_v19 = vld [vmem:[%s1018_s3 + $0x38] sm:$0xff] (!%p230_p10)  ;;  %s611_s9 = sshll.u32 (!%p230_p10), %s265_s8, 3  ;;  %s618_s12 = sshll.u32 (!%p230_p10), %s813_s21, 7 }
  0x12   : > { %668 = vmatprep.subr.bf16.mxu0 (!%p230_p10), %v823_v3  ;;  %673 = vmatpush3.bf16.msra.mxu1 (!%p230_p10), %v672_v11  ;;  %v678_v17 = vpack.c.bf16 (!%p230_p10), %v388_v16, %v387_v15  ;;  %v681_v20 = vpack.c.bf16 (!%p230_p10), %v390_v19, %v389_v18  ;;  %v613_v21 = vld [vmem:[%s1017_s2] ss:$0 sm:$0xff] (!%p230_p10)  ;;  %s267_s13 = scalar_lea.vmem (!%p230_p10), [#allocation3], %s611_s9  ;;  %s967_s17 = scalar_lea.hbm (!%p230_p10), %s1020_s5, %s618_s12 }
  0x13   : > { %674 = vmatprep.subr.bf16.mxu1 (!%p230_p10), %v823_v3  ;;  %v616_v34 = vld [vmem:[%s1019_s4] ss:$0 sm:$0xff] (!%p230_p10)  ;;  %s494_s14 = sshll.u32 (!%p230_p10), %s267_s13, 4  ;;  %s481_s24 = scalar_lea.sflag (!%p230_p10), [#allocation4], %s265_s8  ;;  %s969_s14 = int_to_ptr.vmem [resolvable:$true] %s494_s14 }
  0x15   : > { %670 = vmatpush3.bf16.msra.mxu0 (!%p230_p10), %v669_v7 }
  0x16   : > { %s269_s15 = scalar_select %p268_p11, %s813_s21, 1  ;;  %676 = vmatpush3.bf16.msra.mxu1 %v675_v14 }
  0x17   : > { %677 = vmatprep.subr.bf16.mxu1 %v823_v3  ;;  %v382_v30 = vld [vmem:[#allocation2] sm:$0xff]  ;;  %s826_s21 = smov [#allocation3]  }
  0x18   : > { %s612_s16 = sshll.u32 %s269_s15, 3  ;;  %s747_s27 = sshll.u32 %s826_s21, 4  ;;  %s748_s27 = int_to_ptr.vmem [resolvable:$false] %s747_s27 }
  0x19   : > { %s271_s25 = scalar_lea.vmem %s1015_s0, %s612_s16  ;;  %s749_s29 = scalar_lea.vmem %s748_s27, 256 }
  0x1a   : > { %v291_v8 = vld [vmem:[%s271_s25] sm:$0xff]  ;;  %679 = vmatpush3.bf16.msra.mxu1 %v678_v17  ;;  %s743_s25 = scalar_lea.vmem %s969_s14, 128  ;;  %p750_p1 = scmp.lt.s32.totalorder %s969_s14, %s748_s27 }
  0x1b   : > { %644 = vmatmul.mubr.msk.f32.vlgmr.msra.gmra.mrb[0].mxu0 %vm289_vm1, %v291_v8  ;;  %680 = vmatprep.subr.bf16.mxu1 %v823_v3  ;;  %p744_p12 = scmp.ne.s32.totalorder %s969_s14, %s743_s25  ;;  %p751_p2 = scmp.lt.s32.totalorder %s749_s29, %s743_s25 }
  0x1d   : > { %p745_p13 = pnand %p744_p12, %p897_p4  ;;  %p752_p3 = por %p751_p2, %p750_p1 }
  0x1e   : > { %682 = vmatpush3.bf16.msra.mxu1 %v681_v20 }
  0x1f   : > { %p746_p0 = pneg %p745_p13 }
  0x21   : > { %p753_p5 = pnand %p752_p3, %p746_p0 }
  0xee   : > { %v373_v22 = vpop.f32.mrb[0].mxu0 }
  0xef   : > { %v374_v23 = vadd.f32 %v613_v21, %v373_v22  ;;  %v645_v24 = vpop.f32.mrb[1].mxu0 }
  0xf1   : > { %v378_v25 = vmul.f32 0.70710677, %v374_v23  ;;  %v377_v27 = vmul.f32 0.5, %v374_v23 }
  0xf3   : > { %741 = verf.f32 %v378_v25 }
  0xfd   : > { %v742_v26 = vpop.eup %741 }
  0xfe   : > { %v380_v28 = vadd.f32 1.0, %v742_v26 }
 0x100   : > { %v381_v29 = vmul.f32 %v380_v28, %v377_v27 }
 0x102   : > { %663 = vmatmul.mubr.msk.f32.vlgmr.msra.gmra.mrb[0].mxu1 %vm391_vm2, %v381_v29 }
 0x1d5   : > { %v461_v31 = vpop.f32.mrb[0].mxu1 }
 0x1d6   : > { %v465_v32 = vadd.f32 %v461_v31, %v382_v30  ;;  %v664_v33 = vpop.f32.mrb[1].mxu1 }
 0x1d8   : > { %466 = vst.msk [vmem:[#allocation2] sm:$0xff] %vm289_vm1, %v465_v32 }
 0x1df   : > { %v470_v35 = vld [vmem:[#allocation2] sm:$0xff] }
 0x1e0   : > { %v478_v36 = vadd.f32 %v616_v34, %v470_v35 }
 0x1e2   : > { %479 = vst.msk [vmem:[%s267_s13] sm:$0xff] %vm289_vm1, %v478_v36 }
 0x1e3   : > { %756 = shalt.err (!%p753_p5)
}
 0x1e4   : > { %s757_s7 = scalar_lea.hbm %s967_s17, 128  ;;  %s761_s10 = scalar_lea.hbm %s1020_s5, 256 }
 0x1e5   : > { %p758_p6 = scmp.ne.s32.totalorder %s967_s17, %s757_s7  ;;  %p762_p10 = scmp.lt.u32.totalorder %s967_s17, %s1020_s5 }
 0x1e6   : > { %p763_p11 = scmp.lt.u32.totalorder %s761_s10, %s757_s7  ;;  %p765_p13 = scmp.lt.u32.totalorder %s757_s7, %s967_s17 }
 0x1e7   : > { %p759_p7 = pnand %p758_p6, %p897_p4 }
 0x1e8   : > { %p764_p12 = por %p763_p11, %p762_p10 }
 0x1e9   : > { %p760_p9 = pneg %p759_p7 }
 0x1ea   : > { %p766_p0 = por %p765_p13, %p764_p12 }
 0x1ec   : > { %p767_p1 = pnand %p766_p0, %p760_p9 }
 0x1ee   : > { %770 = shalt.err (!%p767_p1)
}
 0x1ef   : > { %683 = dma.vmem_to_hbm [thread:$0]  (%p897_p4), %s969_s14, 128, %s967_s17, %s481_s24  }
 0x1f0 PF: > { %p689_p2 = scmp.ge.s32.totalorder %s821_s23, 2  ;;  %s506_s13 = sand.u32 1, %s801_s18  }
 0x1f1   : > { %s507_s15 = scalar_lea.sflag [#allocation4], %s506_s13 }
 0x1f2   : > { %p686_p3 = pnand %p689_p2, %p904_p8 }
 0x1f4   : > { %796 = dma.done.wait (!%p686_p3), %s507_s15, 128  }
 0x1f5   : > { %798 = vsyncadd (!%p686_p3), %s507_s15, 4294967168  ;;  %s18_s23 = sadd.s32 1, %s821_s23   ;;  %s1023_s18 = smov %s805_s19 }
 0x1f6   : > { %p15_p5 = scmp.ge.s32.totalorder %s18_s23, 4   ;;  %s1024_s19 = smov %s809_s20 }
 0x1f7   : > { %s1025_s20 = smov %s910_s6  ;;  %s1026_s21 = smov %s817_s22 }
 0x1f8   : > { %s1027_s22 = smov %s1029_s26  ;;  %17 = sbr.rel (!%p15_p5) target bundleno = 4 (0x4), region = 92 }
 0x1ff   :  { %512 = vsyncpa [#allocation4], 1 }
 0x200   :  { %514 = vsyncpa [#allocation4 + $0x1], 1 }

</bundles_post_ra>
